<compile_context>
chip_gen: v7x
topology: tpu7x:2x2x1
jax: 0.10.0
libtpu: 0.0.40
codegen_flags: <defaults>
</compile_context>

<pallas_src>
import functools

import jax
import jax.numpy as jnp
from jax import lax
from jax.experimental import pallas as pl
from jax.experimental.pallas import tpu as pltpu


def _round_up(x: int, m: int) -> int:
    return (x + m - 1) // m * m


def _cdiv(a: int, b: int) -> int:
    return (a + b - 1) // b


# ----------------------------------------------------------------------------
# Kernel factory: one grid step = the FULL network for one row-block of rows.
# ----------------------------------------------------------------------------
def _make_kernel(hidden_act: str, num_hidden_rest: int, compute_dtype):
    def act(y):
        if hidden_act == "tanh":
            return jnp.tanh(y)
        if hidden_act == "sigmoid":
            return jax.nn.sigmoid(y)
        return jnp.maximum(y, 0.0)  # ReLU default

    if num_hidden_rest > 0:
        def kernel(x_ref, w0_ref, b0_ref, wh_ref, bh_ref, wf_ref, bf_ref, o_ref):
            # Layer 0: (TB, F_in) @ (F_in, F_h), f32 accumulation on the MXU.
            h = act(jnp.dot(x_ref[...], w0_ref[...],
                            preferred_element_type=jnp.float32)
                    + b0_ref[...].astype(jnp.float32)).astype(compute_dtype)
            # Remaining hidden layers (statically unrolled; weights resident).
            for l in range(num_hidden_rest):
                h = act(jnp.dot(h, wh_ref[l],
                                preferred_element_type=jnp.float32)
                        + bh_ref[l].astype(jnp.float32)).astype(compute_dtype)
            # Final layer + sigmoid, single down-cast at the store.
            y = jnp.dot(h, wf_ref[...], preferred_element_type=jnp.float32)
            o_ref[...] = jax.nn.sigmoid(
                y + bf_ref[...].astype(jnp.float32)).astype(o_ref.dtype)
    else:
        def kernel(x_ref, w0_ref, b0_ref, wf_ref, bf_ref, o_ref):
            h = act(jnp.dot(x_ref[...], w0_ref[...],
                            preferred_element_type=jnp.float32)
                    + b0_ref[...].astype(jnp.float32)).astype(compute_dtype)
            y = jnp.dot(h, wf_ref[...], preferred_element_type=jnp.float32)
            o_ref[...] = jax.nn.sigmoid(
                y + bf_ref[...].astype(jnp.float32)).astype(o_ref.dtype)

    return kernel


# ----------------------------------------------------------------------------
# One-time parameter packing (hoisted out of the per-call path).
# Zero-padded rows/cols are mathematically inert (they multiply by zero).
# ----------------------------------------------------------------------------
def pack_classifier_params(params, compute_dtype=jnp.float32):
    num_hidden = len(params) - 1
    assert num_hidden >= 1, "need at least one hidden layer"
    input_dim, hidden_dim = params[0][0].shape
    output_dim = params[-1][0].shape[1]
    F_in = _round_up(input_dim, 128)
    F_h = _round_up(hidden_dim, 128)
    F_out = _round_up(output_dim, 128)
    dt = compute_dtype

    w0 = jnp.zeros((F_in, F_h), dt).at[:input_dim, :hidden_dim].set(
        params[0][0].astype(dt))
    b0 = jnp.zeros((1, F_h), dt).at[0, :hidden_dim].set(params[0][1].astype(dt))

    rest = params[1:-1]
    if rest:
        wh = jnp.zeros((len(rest), F_h, F_h), dt)
        bh = jnp.zeros((len(rest), 1, F_h), dt)
        for i, (w, b) in enumerate(rest):
            wh = wh.at[i, :hidden_dim, :hidden_dim].set(w.astype(dt))
            bh = bh.at[i, 0, :hidden_dim].set(b.astype(dt))
    else:
        wh = bh = None

    wf = jnp.zeros((F_h, F_out), dt).at[:hidden_dim, :output_dim].set(
        params[-1][0].astype(dt))
    bf = jnp.zeros((1, F_out), dt).at[0, :output_dim].set(params[-1][1].astype(dt))

    return (w0, b0, wh, bh, wf, bf), output_dim


# ----------------------------------------------------------------------------
# Fused forward pass: single pallas_call, weights VMEM-resident.
# ----------------------------------------------------------------------------
def classifier_apply(x, w0, b0, wh, bh, wf, bf, *, layer_type, output_dim):
    hidden_act = {"Tanh": "tanh", "Sigmoid": "sigmoid"}.get(layer_type, "relu")
    B, input_dim = x.shape
    F_in, F_h = w0.shape
    F_out = wf.shape[1]
    num_hidden_rest = 0 if wh is None else wh.shape[0]
    compute_dtype = w0.dtype
    out_dtype = x.dtype
    itemsize = jnp.dtype(compute_dtype).itemsize

    # ---- Row-block size from a VMEM budget (weights are resident) -----------
    sublane = max(8, 32 // itemsize)            # 8 rows f32, 16 rows bf16
    TILE_BUDGET = 24 << 20                      # bytes for I/O pipeline + activations
    per_row = itemsize * 2 * (F_in + F_out) + 8 * F_h   # 2x-buffered x/out + f32 act
    tb = max(sublane, min(TILE_BUDGET // per_row, 512))
    if B > 256:
        # Keep >= 2 row blocks so both TensorCores get work on v7x megacore.
        tb = min(tb, _round_up(_cdiv(B, 2), sublane))
    tb = _round_up(min(tb, _round_up(B, sublane)), sublane)
    B_pad = _round_up(B, tb)
    n_row_blocks = B_pad // tb

    x_pad = jnp.zeros((B_pad, F_in), compute_dtype).at[:B, :input_dim].set(
        x.astype(compute_dtype))

    kernel = _make_kernel(hidden_act, num_hidden_rest, compute_dtype)

    # Constant index maps => weights DMA'd from HBM exactly once per call.
    in_specs = [
        pl.BlockSpec((tb, F_in), lambda i: (i, 0)),
        pl.BlockSpec((F_in, F_h), lambda i: (0, 0)),
        pl.BlockSpec((1, F_h), lambda i: (0, 0)),
    ]
    args = [x_pad, w0, b0]
    if num_hidden_rest:
        in_specs += [
            pl.BlockSpec((num_hidden_rest, F_h, F_h), lambda i: (0, 0, 0)),
            pl.BlockSpec((num_hidden_rest, 1, F_h), lambda i: (0, 0, 0)),
        ]
        args += [wh, bh]
    in_specs += [
        pl.BlockSpec((F_h, F_out), lambda i: (0, 0)),
        pl.BlockSpec((1, F_out), lambda i: (0, 0)),
    ]
    args += [wf, bf]

    weight_elems = (F_in * F_h + num_hidden_rest * F_h * F_h + F_h * F_out
                    + (1 + num_hidden_rest) * F_h + F_out)
    # Resident weights still get the default second pipeline buffer -> x2.
    vmem_need = (2 * itemsize * weight_elems
                 + itemsize * tb * 2 * (F_in + F_out)
                 + 8 * tb * F_h)
    vmem_limit = int(min(max(2 * vmem_need, 32 << 20), 56 << 20))

    n_hidden_trans = ((1 + num_hidden_rest) * F_h
                      if hidden_act in ("tanh", "sigmoid") else 0)
    cost = pl.CostEstimate(
        flops=2 * B_pad * (F_in * F_h + num_hidden_rest * F_h * F_h + F_h * F_out),
        transcendentals=B_pad * (n_hidden_trans + F_out),
        bytes_accessed=(itemsize * (B_pad * F_in + weight_elems)
                        + jnp.dtype(out_dtype).itemsize * B_pad * F_out),
    )

    out_pad = pl.pallas_call(
        kernel,
        out_shape=jax.ShapeDtypeStruct((B_pad, F_out), out_dtype),
        grid_spec=pltpu.PrefetchScalarGridSpec(
            num_scalar_prefetch=0,
            grid=(n_row_blocks,),
            in_specs=in_specs,
            out_specs=pl.BlockSpec((tb, F_out), lambda i: (i, 0)),
        ),
        compiler_params=pltpu.CompilerParams(
            dimension_semantics=("parallel",),
            vmem_limit_bytes=vmem_limit,
        ),
        cost_estimate=cost,
    )(*args)

    return out_pad[:B, :output_dim]


def classifier_forward(params, x, layer_type, compute_dtype=None):
    """Convenience wrapper: pack + apply in one call."""
    compute_dtype = compute_dtype or x.dtype
    packed, output_dim = pack_classifier_params(params, compute_dtype)
    return classifier_apply(x, *packed, layer_type=layer_type,
                            output_dim=output_dim)


# ----------------------------------------------------------------------------
# Parameter construction (matches nn.Linear's U(-1/sqrt(fan_in), +) default).
# ----------------------------------------------------------------------------
def init_classifier_params(key, input_dim, hidden_dim, output_dim, num_layers,
                           dtype=jnp.float32):
    params = []
    in_features = input_dim
    dims = [hidden_dim] * num_layers + [output_dim]
    for out_features in dims:
        key, kw, kb = jax.random.split(key, 3)
        bound = 1.0 / (in_features ** 0.5)
        w = jax.random.uniform(kw, (in_features, out_features), dtype,
                               minval=-bound, maxval=bound)
        b = jax.random.uniform(kb, (out_features,), dtype,
                               minval=-bound, maxval=bound)
        params.append((w, b))
        in_features = out_features
    return params


# ----------------------------------------------------------------------------
# Demo / smoke test
# ----------------------------------------------------------------------------
if __name__ == "__main__":
    batch = 8
    input_dim = 32
    hidden_dim = 32
    output_dim = 8
    num_layers = 2

    key = jax.random.PRNGKey(0)
    key, kx = jax.random.split(key)
    x = jax.random.normal(kx, (batch, input_dim), dtype=jnp.float32)
    params = init_classifier_params(key, input_dim, hidden_dim, output_dim,
                                    num_layers)

    def ref_forward(params, x, layer_type):
        act = {"Tanh": jnp.tanh, "Sigmoid": jax.nn.sigmoid}.get(
            layer_type, lambda v: jnp.maximum(v, 0.0))
        h = x
        for w, b in params[:-1]:
            h = act(jnp.dot(h, w, precision=lax.Precision.HIGHEST) + b)
        w, b = params[-1]
        return jax.nn.sigmoid(jnp.dot(h, w, precision=lax.Precision.HIGHEST) + b)

    # f32 path: pack once, jit the fused apply (packing hoisted off hot path).
    for layer_type in ("ReLU", "Tanh", "Sigmoid"):
        packed, out_dim = pack_classifier_params(params, jnp.float32)
        fwd = jax.jit(functools.partial(classifier_apply,
                                        layer_type=layer_type,
                                        output_dim=out_dim))
        out = jax.block_until_ready(fwd(x, *packed))
        ref = ref_forward(params, x, layer_type)
        assert out.shape == (batch, output_dim)
        err = float(jnp.max(jnp.abs(out - ref)))
        assert err < 5e-3, f"{layer_type} f32 mismatch: max abs err {err}"

    # bf16 MXU-operand path (bf16 weights/activations, f32 accumulation).
    packed16, out_dim = pack_classifier_params(params, jnp.bfloat16)
    fwd16 = jax.jit(functools.partial(classifier_apply,
                                      layer_type="Tanh", output_dim=out_dim))
    out16 = jax.block_until_ready(fwd16(x, *packed16))
    ref16 = ref_forward(params, x, "Tanh")
    err16 = float(jnp.max(jnp.abs(out16 - ref16)))
    assert out16.shape == (batch, output_dim)
    assert err16 < 3e-2, f"bf16 mismatch: max abs err {err16}"

    print("KERNEL_OK")
</pallas_src>

<mosaic_0001>
module attributes {stable_mosaic.version = 11 : i64} {
  func.func @kernel(%arg0: i32, %arg1: memref<8x128xf32, #tpu.memory_space<vmem>>, %arg2: memref<128x128xf32, #tpu.memory_space<vmem>>, %arg3: memref<1x128xf32, #tpu.memory_space<vmem>>, %arg4: memref<1x128x128xf32, #tpu.memory_space<vmem>>, %arg5: memref<1x1x128xf32, #tpu.memory_space<vmem>>, %arg6: memref<128x128xf32, #tpu.memory_space<vmem>>, %arg7: memref<1x128xf32, #tpu.memory_space<vmem>>, %arg8: memref<8x128xf32, #tpu.memory_space<vmem>>) attributes {dimension_semantics = [#tpu.dimension_semantics<parallel>], iteration_bounds = array<i64: 1>, scalar_prefetch = 0 : i64, scratch_operands = 0 : i64, tpu.core_type = #tpu.core_type<tc>, window_params = [{transform_indices = @transform_0, window_bounds = array<i64: 8, 128>}, {pipeline_mode = #tpu.pipeline_mode<synchronous>, transform_indices = @transform_1, window_bounds = array<i64: 128, 128>}, {pipeline_mode = #tpu.pipeline_mode<synchronous>, transform_indices = @transform_2, window_bounds = array<i64: 1, 128>}, {pipeline_mode = #tpu.pipeline_mode<synchronous>, transform_indices = @transform_3, window_bounds = array<i64: 1, 128, 128>}, {pipeline_mode = #tpu.pipeline_mode<synchronous>, transform_indices = @transform_4, window_bounds = array<i64: 1, 1, 128>}, {pipeline_mode = #tpu.pipeline_mode<synchronous>, transform_indices = @transform_5, window_bounds = array<i64: 128, 128>}, {pipeline_mode = #tpu.pipeline_mode<synchronous>, transform_indices = @transform_6, window_bounds = array<i64: 1, 128>}, {transform_indices = @transform_7, window_bounds = array<i64: 8, 128>}]} {
    %c0 = arith.constant 0 : index
    %c0_0 = arith.constant 0 : index
    %0 = vector.load %arg1[%c0, %c0_0] : memref<8x128xf32, #tpu.memory_space<vmem>>, vector<8x128xf32>
    %c0_1 = arith.constant 0 : index
    %c0_2 = arith.constant 0 : index
    %1 = vector.load %arg2[%c0_1, %c0_2] : memref<128x128xf32, #tpu.memory_space<vmem>>, vector<128x128xf32>
    %cst = arith.constant dense<0.000000e+00> : vector<8x128xf32>
    %2 = tpu.matmul %0, %1, %cst {dimension_numbers = #tpu.dot_dimension_numbers<[1], [0], [0], [1], [0, 0, 1, 1], [], []>} : vector<8x128xf32>, vector<128x128xf32>, vector<8x128xf32> -> vector<8x128xf32>
    %c0_3 = arith.constant 0 : index
    %c0_4 = arith.constant 0 : index
    %3 = vector.load %arg3[%c0_3, %c0_4] : memref<1x128xf32, #tpu.memory_space<vmem>>, vector<1x128xf32>
    %4 = vector.broadcast %3 : vector<1x128xf32> to vector<8x128xf32>
    %5 = arith.addf %2, %4 : vector<8x128xf32>
    %cst_5 = arith.constant 0.000000e+00 : f32
    %6 = vector.broadcast %cst_5 : f32 to vector<8x128xf32>
    %7 = arith.maximumf %5, %6 : vector<8x128xf32>
    %c0_6 = arith.constant 0 : index
    %c0_7 = arith.constant 0 : index
    %c0_8 = arith.constant 0 : index
    %8 = vector.load %arg4[%c0_6, %c0_7, %c0_8] : memref<1x128x128xf32, #tpu.memory_space<vmem>>, vector<1x128x128xf32>
    %9 = vector.shape_cast %8 : vector<1x128x128xf32> to vector<128x128xf32>
    %cst_9 = arith.constant dense<0.000000e+00> : vector<8x128xf32>
    %10 = tpu.matmul %7, %9, %cst_9 {dimension_numbers = #tpu.dot_dimension_numbers<[1], [0], [0], [1], [0, 0, 1, 1], [], []>} : vector<8x128xf32>, vector<128x128xf32>, vector<8x128xf32> -> vector<8x128xf32>
    %c0_10 = arith.constant 0 : index
    %c0_11 = arith.constant 0 : index
    %c0_12 = arith.constant 0 : index
    %11 = vector.load %arg5[%c0_10, %c0_11, %c0_12] : memref<1x1x128xf32, #tpu.memory_space<vmem>>, vector<1x1x128xf32>
    %12 = vector.shape_cast %11 : vector<1x1x128xf32> to vector<1x128xf32>
    %13 = vector.broadcast %12 : vector<1x128xf32> to vector<8x128xf32>
    %14 = arith.addf %10, %13 : vector<8x128xf32>
    %cst_13 = arith.constant 0.000000e+00 : f32
    %15 = vector.broadcast %cst_13 : f32 to vector<8x128xf32>
    %16 = arith.maximumf %14, %15 : vector<8x128xf32>
    %c0_14 = arith.constant 0 : index
    %c0_15 = arith.constant 0 : index
    %17 = vector.load %arg6[%c0_14, %c0_15] : memref<128x128xf32, #tpu.memory_space<vmem>>, vector<128x128xf32>
    %cst_16 = arith.constant dense<0.000000e+00> : vector<8x128xf32>
    %18 = tpu.matmul %16, %17, %cst_16 {dimension_numbers = #tpu.dot_dimension_numbers<[1], [0], [0], [1], [0, 0, 1, 1], [], []>} : vector<8x128xf32>, vector<128x128xf32>, vector<8x128xf32> -> vector<8x128xf32>
    %c0_17 = arith.constant 0 : index
    %c0_18 = arith.constant 0 : index
    %19 = vector.load %arg7[%c0_17, %c0_18] : memref<1x128xf32, #tpu.memory_space<vmem>>, vector<1x128xf32>
    %20 = vector.broadcast %19 : vector<1x128xf32> to vector<8x128xf32>
    %21 = arith.addf %18, %20 : vector<8x128xf32>
    %22 = arith.negf %21 : vector<8x128xf32>
    %23 = math.exp %22 : vector<8x128xf32>
    %cst_19 = arith.constant 1.000000e+00 : f32
    %24 = vector.broadcast %cst_19 : f32 to vector<8x128xf32>
    %25 = arith.addf %24, %23 : vector<8x128xf32>
    %26 = arith.divf %24, %25 : vector<8x128xf32>
    %c0_20 = arith.constant 0 : index
    %c0_21 = arith.constant 0 : index
    %27 = vector.load %arg8[%c0_20, %c0_21] : memref<8x128xf32, #tpu.memory_space<vmem>>, vector<8x128xf32>
    tpu.vector_store %arg8[%c0_20, %c0_21], %26 {strides = array<i32>} : memref<8x128xf32, #tpu.memory_space<vmem>>, vector<8x128xf32>,
    return
  }
  func.func @transform_0(%arg0: i32) -> (i32, i32) {
    %c0_i32 = arith.constant 0 : i32
    %c0_i32_0 = arith.constant 0 : i32
    return %arg0, %c0_i32 : i32, i32
  }
  func.func @transform_1(%arg0: i32) -> (i32, i32) {
    %c0_i32 = arith.constant 0 : i32
    %c0_i32_0 = arith.constant 0 : i32
    %c0_i32_1 = arith.constant 0 : i32
    return %c0_i32, %c0_i32_0 : i32, i32
  }
  func.func @transform_2(%arg0: i32) -> (i32, i32) {
    %c0_i32 = arith.constant 0 : i32
    %c0_i32_0 = arith.constant 0 : i32
    %c0_i32_1 = arith.constant 0 : i32
    return %c0_i32, %c0_i32_0 : i32, i32
  }
  func.func @transform_3(%arg0: i32) -> (i32, i32, i32) {
    %c0_i32 = arith.constant 0 : i32
    %c0_i32_0 = arith.constant 0 : i32
    %c0_i32_1 = arith.constant 0 : i32
    %c0_i32_2 = arith.constant 0 : i32
    return %c0_i32, %c0_i32_0, %c0_i32_1 : i32, i32, i32
  }
  func.func @transform_4(%arg0: i32) -> (i32, i32, i32) {
    %c0_i32 = arith.constant 0 : i32
    %c0_i32_0 = arith.constant 0 : i32
    %c0_i32_1 = arith.constant 0 : i32
    %c0_i32_2 = arith.constant 0 : i32
    return %c0_i32, %c0_i32_0, %c0_i32_1 : i32, i32, i32
  }
  func.func @transform_5(%arg0: i32) -> (i32, i32) {
    %c0_i32 = arith.constant 0 : i32
    %c0_i32_0 = arith.constant 0 : i32
    %c0_i32_1 = arith.constant 0 : i32
    return %c0_i32, %c0_i32_0 : i32, i32
  }
  func.func @transform_6(%arg0: i32) -> (i32, i32) {
    %c0_i32 = arith.constant 0 : i32
    %c0_i32_0 = arith.constant 0 : i32
    %c0_i32_1 = arith.constant 0 : i32
    return %c0_i32, %c0_i32_0 : i32, i32
  }
  func.func @transform_7(%arg0: i32) -> (i32, i32) {
    %c0_i32 = arith.constant 0 : i32
    %c0_i32_0 = arith.constant 0 : i32
    return %arg0, %c0_i32 : i32, i32
  }
}

</mosaic_0001>

<bundles_post_ra>
// kernel: classifier_apply.1
= control target key start
LH: loop header
LB: loop body
LE: loop exit
PB: predicated region body
PF: predicated region fallthrough
CT: control target
= control target key end

     0   :  { %12 = vsyncpa [#allocation3], 0  ;;  %s867_s0 = inlined_call_operand.vmem [shape: f32[8,128], index: 0, kind: input, shape index: {}]   ;;  %s868_s1 = inlined_call_operand.hbm [shape: f32[128,128], index: 1, kind: input, shape index: {}]   ;;  %s869_s2 = inlined_call_operand.vmem [shape: f32[1,128], index: 2, kind: input, shape index: {}]   ;;  %s870_s3 = inlined_call_operand.hbm [shape: f32[1,128,128], index: 3, kind: input, shape index: {}]   ;;  %s871_s4 = inlined_call_operand.vmem [shape: f32[1,1,128], index: 4, kind: input, shape index: {}]   ;;  %s872_s5 = inlined_call_operand.hbm [shape: f32[128,128], index: 5, kind: input, shape index: {}]   ;;  %s873_s6 = inlined_call_operand.vmem [shape: f32[1,128], index: 6, kind: input, shape index: {}]   ;;  %s874_s7 = inlined_call_operand.hbm [shape: f32[8,128], index: 7, kind: output, shape index: {}]  }
   0x1   :  { %13 = vsyncpa [#allocation6], 0 }
   0x2   :  { %14 = vsyncpa [#allocation4], 0  ;;  %s712_s24 = smov [#allocation5]   ;;  %s713_s26 = smov [#allocation2]  }
   0x3   :  { %s36_s25 = sshll.u32 %s712_s24, 4  ;;  %s22_s27 = sshll.u32 %s713_s26, 4  ;;  %s37_s25 = int_to_ptr.vmem [resolvable:$true] %s36_s25  ;;  %s761_s27 = int_to_ptr.vmem [resolvable:$true] %s22_s27 }
   0x4   :  { %s618_s30 = scalar_lea.hbm %s870_s3, 2048 }
   0x5   :  { %p619_p0 = scmp.ne.s32.totalorder %s870_s3, %s618_s30  ;;  %p622_p1 = scmp.lt.u32.totalorder %s618_s30, %s870_s3 }
   0x7   :  { %p624_p2 = pnand %p622_p1, %p619_p0 }
   0x9   :  { %627 = shalt.err (!%p624_p2)
}
   0xa   :  { %s628_s12 = scalar_lea.vmem %s37_s25, 2048  ;;  %p633_p4 = scmp.lt.s32.totalorder %s37_s25, %s37_s25 }
   0xb   :  { %p629_p3 = scmp.ne.s32.totalorder %s37_s25, %s628_s12  ;;  %p634_p5 = scmp.lt.s32.totalorder %s628_s12, %s628_s12 }
   0xd   :  { %p635_p6 = por %p634_p5, %p633_p4 }
   0xf   :  { %p636_p7 = pnand %p635_p6, %p629_p3 }
  0x11   :  { %639 = shalt.err (!%p636_p7)
}
  0x12   :  { %s714_s13 = smov 128   ;;  %s715_s14 = smov 8  }
  0x13   :  { %42 = dma.hbm_to_vmem [thread:$0]  %s870_s3, 2048, %s37_s25, [#allocation6], %s714_s13, %s714_s13, %s715_s14  }
  0x14   :  { %s640_s19 = scalar_lea.hbm %s868_s1, 2048 }
  0x15   :  { %p641_p8 = scmp.ne.s32.totalorder %s868_s1, %s640_s19  ;;  %p644_p9 = scmp.lt.u32.totalorder %s640_s19, %s868_s1 }
  0x17   :  { %p646_p10 = pnand %p644_p9, %p641_p8 }
  0x19   :  { %649 = shalt.err (!%p646_p10)
}
  0x1a   :  { %s650_s24 = scalar_lea.vmem %s761_s27, 2048  ;;  %p655_p12 = scmp.lt.s32.totalorder %s761_s27, %s761_s27 }
  0x1b   :  { %p651_p11 = scmp.ne.s32.totalorder %s761_s27, %s650_s24  ;;  %p656_p13 = scmp.lt.s32.totalorder %s650_s24, %s650_s24 }
  0x1d   :  { %p657_p0 = por %p656_p13, %p655_p12 }
  0x1f   :  { %p658_p1 = pnand %p657_p0, %p651_p11 }
  0x21   :  { %661 = shalt.err (!%p658_p1)
}
  0x22   :  { %28 = dma.hbm_to_vmem [thread:$0]  %s868_s1, 2048, %s761_s27, [#allocation3], %s714_s13, %s714_s13, %s715_s14  }
  0x23   :  { %s716_s26 = smov [#allocation7]   ;;  %s662_s8 = scalar_lea.hbm %s872_s5, 2048 }
  0x24   :  { %s50_s28 = sshll.u32 %s716_s26, 4  ;;  %p663_p2 = scmp.ne.s32.totalorder %s872_s5, %s662_s8  ;;  %s51_s28 = int_to_ptr.vmem [resolvable:$true] %s50_s28 }
  0x25   :  { %p666_p3 = scmp.lt.u32.totalorder %s662_s8, %s872_s5 }
  0x27   :  { %p668_p4 = pnand %p666_p3, %p663_p2 }
  0x29   :  { %671 = shalt.err (!%p668_p4)
}
  0x2a   :  { %s672_s15 = scalar_lea.vmem %s51_s28, 2048  ;;  %p677_p6 = scmp.lt.s32.totalorder %s51_s28, %s51_s28 }
  0x2b   :  { %p673_p5 = scmp.ne.s32.totalorder %s51_s28, %s672_s15  ;;  %p678_p7 = scmp.lt.s32.totalorder %s672_s15, %s672_s15 }
  0x2d   :  { %p679_p8 = por %p678_p7, %p677_p6 }
  0x2f   :  { %p680_p9 = pnand %p679_p8, %p673_p5 }
  0x31   :  { %683 = shalt.err (!%p680_p9)
}
  0x32   :  { %56 = dma.hbm_to_vmem [thread:$0]  %s872_s5, 2048, %s51_s28, [#allocation6], %s714_s13, %s714_s13, %s715_s14  }
  0x33   :  { %706 = dma.done.wait [#allocation3], 2048  }
  0x34   :  { %707 = vsyncadd [#allocation3], 4294965248 }
  0x35   :  { %708 = dma.done.wait [#allocation6], 4096  }
  0x36   :  { %709 = vsyncadd [#allocation6], 4294963200  ;;  %v717_v0 = vmov 0.0|0.0   ;;  %vm718_vm0 = vmmov 0   ;;  %v719_v1 = vmov 0.0   ;;  %v69_v2 = vld [vmem:[#allocation2] sm:$0xff] }
  0x37   :  { %533 = vmatprep.subr.bf16.mxu0 %v717_v0  ;;  %460 = vmatprep.mubr.msk.f32.mxu0 %vm718_vm0, %v719_v1  ;;  %v70_v3 = vld [vmem:[#allocation2 + $0x8] sm:$0xff]  ;;  %v71_v4 = vld [vmem:[#allocation2 + $0x10] sm:$0xff]  ;;  %v72_v6 = vld [vmem:[#allocation2 + $0x18] sm:$0xff]  ;;  %s720_s19 = smov [#allocation8]  }
  0x38   :  { %557 = vmatprep.subr.bf16.mxu1 %v717_v0  ;;  %495 = vmatprep.mubr.msk.f32.mxu1 %vm718_vm0, %v719_v1  ;;  %v534_v5 = vpack.c.bf16 %v70_v3, %v69_v2  ;;  %v537_v7 = vpack.c.bf16 %v72_v6, %v71_v4  ;;  %v73_v8 = vld [vmem:[#allocation2 + $0x20] sm:$0xff]  ;;  %v74_v9 = vld [vmem:[#allocation2 + $0x28] sm:$0xff]  ;;  %v165_v12 = vld [vmem:[#allocation5 + $0x10] sm:$0xff]  ;;  %s363_s20 = sshll.u32 %s720_s19, 4  ;;  %s364_s20 = int_to_ptr.vmem [resolvable:$true] %s363_s20 }
  0x39   :  { %v163_v10 = vld [vmem:[#allocation5] sm:$0xff]  ;;  %v164_v11 = vld [vmem:[#allocation5 + $0x8] sm:$0xff]  ;;  %v166_v13 = vld [vmem:[#allocation5 + $0x18] sm:$0xff]  ;;  %v540_v14 = vpack.c.bf16 %v74_v9, %v73_v8  ;;  %p689_p11 = scmp.lt.s32.totalorder %s364_s20, %s364_s20 }
  0x3a   :  { %535 = vmatpush3.bf16.msra.mxu0 %v534_v5  ;;  %v558_v15 = vpack.c.bf16 %v164_v11, %v163_v10  ;;  %v75_v16 = vld [vmem:[#allocation2 + $0x30] sm:$0xff]  ;;  %v76_v17 = vld [vmem:[#allocation2 + $0x38] sm:$0xff]  ;;  %v561_v18 = vpack.c.bf16 %v166_v13, %v165_v12  ;;  %v167_v19 = vld [vmem:[#allocation5 + $0x20] sm:$0xff] }
  0x3b   :  { %536 = vmatprep.subr.bf16.mxu0 %v717_v0  ;;  %v168_v20 = vld [vmem:[#allocation5 + $0x28] sm:$0xff]  ;;  %v543_v21 = vpack.c.bf16 %v76_v17, %v75_v16  ;;  %v77_v22 = vld [vmem:[#allocation2 + $0x40] sm:$0xff]  ;;  %v169_v25 = vld [vmem:[#allocation5 + $0x30] sm:$0xff] }
  0x3c   :  { %559 = vmatpush3.bf16.msra.mxu1 %v558_v15  ;;  %v78_v23 = vld [vmem:[#allocation2 + $0x48] sm:$0xff]  ;;  %v564_v24 = vpack.c.bf16 %v168_v20, %v167_v19  ;;  %v170_v26 = vld [vmem:[#allocation5 + $0x38] sm:$0xff]  ;;  %v79_v28 = vld [vmem:[#allocation2 + $0x50] sm:$0xff] }
  0x3d   :  { %560 = vmatprep.subr.bf16.mxu1 %v717_v0  ;;  %v546_v27 = vpack.c.bf16 %v78_v23, %v77_v22  ;;  %v80_v29 = vld [vmem:[#allocation2 + $0x58] sm:$0xff]  ;;  %v567_v30 = vpack.c.bf16 %v170_v26, %v169_v25  ;;  %v171_v31 = vld [vmem:[#allocation5 + $0x40] sm:$0xff]  ;;  %v172_v32 = vld [vmem:[#allocation5 + $0x48] sm:$0xff] }
  0x3e   :  { %538 = vmatpush3.bf16.msra.mxu0 %v537_v7  ;;  %v549_v33 = vpack.c.bf16 %v80_v29, %v79_v28  ;;  %v81_v34 = vld [vmem:[#allocation2 + $0x60] sm:$0xff]  ;;  %v82_v35 = vld [vmem:[#allocation2 + $0x68] sm:$0xff]  ;;  %v570_v36 = vpack.c.bf16 %v172_v32, %v171_v31  ;;  %v173_v37 = vld [vmem:[#allocation5 + $0x50] sm:$0xff] }
  0x3f   :  { %539 = vmatprep.subr.bf16.mxu0 %v717_v0  ;;  %v174_v38 = vld [vmem:[#allocation5 + $0x58] sm:$0xff]  ;;  %v552_v39 = vpack.c.bf16 %v82_v35, %v81_v34  ;;  %v83_v40 = vld [vmem:[#allocation2 + $0x70] sm:$0xff]  ;;  %v175_v43 = vld [vmem:[#allocation5 + $0x60] sm:$0xff] }
  0x40   :  { %562 = vmatpush3.bf16.msra.mxu1 %v561_v18  ;;  %v84_v41 = vld [vmem:[#allocation2 + $0x78] sm:$0xff]  ;;  %v573_v42 = vpack.c.bf16 %v174_v38, %v173_v37  ;;  %v176_v44 = vld [vmem:[#allocation5 + $0x68] sm:$0xff]  ;;  %v68_v47 = vld [vmem:[%s867_s0] sm:$0xff] }
  0x41   :  { %563 = vmatprep.subr.bf16.mxu1 %v717_v0  ;;  %v555_v45 = vpack.c.bf16 %v84_v41, %v83_v40  ;;  %v576_v46 = vpack.c.bf16 %v176_v44, %v175_v43  ;;  %v177_v48 = vld [vmem:[#allocation5 + $0x70] sm:$0xff]  ;;  %v178_v49 = vld [vmem:[#allocation5 + $0x78] sm:$0xff]  ;;  %v257_v51 = vld [vmem:[#allocation7] sm:$0xff] }
  0x42   :  { %541 = vmatpush3.bf16.msra.mxu0 %v540_v14  ;;  %v579_v50 = vpack.c.bf16 %v178_v49, %v177_v48  ;;  %v258_v52 = vld [vmem:[#allocation7 + $0x8] sm:$0xff]  ;;  %v259_v53 = vld [vmem:[#allocation7 + $0x10] sm:$0xff]  ;;  %v260_v55 = vld [vmem:[#allocation7 + $0x18] sm:$0xff] }
  0x43   :  { %542 = vmatprep.subr.bf16.mxu0 %v717_v0  ;;  %v582_v54 = vpack.c.bf16 %v258_v52, %v257_v51  ;;  %v585_v56 = vpack.c.bf16 %v260_v55, %v259_v53  ;;  %v261_v57 = vld [vmem:[#allocation7 + $0x20] sm:$0xff]  ;;  %v262_v58 = vld [vmem:[#allocation7 + $0x28] sm:$0xff]  ;;  %v263_v60 = vld [vmem:[#allocation7 + $0x30] sm:$0xff] }
  0x44   :  { %565 = vmatpush3.bf16.msra.mxu1 %v564_v24  ;;  %v588_v59 = vpack.c.bf16 %v262_v58, %v261_v57  ;;  %v264_v61 = vld [vmem:[#allocation7 + $0x38] sm:$0xff]  ;;  %v265_v63 = vld [vmem:[#allocation7 + $0x40] sm:$0xff]  ;;  %v267_v3 = vld [vmem:[#allocation7 + $0x50] sm:$0xff] }
  0x45   :  { %566 = vmatprep.subr.bf16.mxu1 %v717_v0  ;;  %v591_v62 = vpack.c.bf16 %v264_v61, %v263_v60  ;;  %v268_v4 = vld [vmem:[#allocation7 + $0x58] sm:$0xff]  ;;  %v269_v6 = vld [vmem:[#allocation7 + $0x60] sm:$0xff]  ;;  %v270_v7 = vld [vmem:[#allocation7 + $0x68] sm:$0xff] }
  0x46   :  { %544 = vmatpush3.bf16.msra.mxu0 %v543_v21  ;;  %v597_v5 = vpack.c.bf16 %v268_v4, %v267_v3  ;;  %v600_v8 = vpack.c.bf16 %v270_v7, %v269_v6  ;;  %v373_v9 = vld [vmem:[%s869_s2] ss:$0 sm:$0xff]  ;;  %v271_v14 = vld [vmem:[#allocation7 + $0x70] sm:$0xff]  ;;  %v272_v15 = vld [vmem:[#allocation7 + $0x78] sm:$0xff] }
  0x47   :  { %545 = vmatprep.subr.bf16.mxu0 %v717_v0  ;;  %v603_v16 = vpack.c.bf16 %v272_v15, %v271_v14  ;;  %v374_v17 = vld [vmem:[%s871_s4] ss:$0 sm:$0xff]  ;;  %s684_s4 = scalar_lea.vmem %s364_s20, 128 }
  0x48   :  { %568 = vmatpush3.bf16.msra.mxu1 %v567_v30  ;;  %v375_v21 = vld [vmem:[%s873_s6] ss:$0 sm:$0xff]  ;;  %p685_p10 = scmp.ne.s32.totalorder %s364_s20, %s684_s4  ;;  %p690_p12 = scmp.lt.s32.totalorder %s684_s4, %s684_s4 }
  0x49   :  { %569 = vmatprep.subr.bf16.mxu1 %v717_v0 }
  0x4a   :  { %547 = vmatpush3.bf16.msra.mxu0 %v546_v27  ;;  %p691_p13 = por %p690_p12, %p689_p11 }
  0x4b   :  { %548 = vmatprep.subr.bf16.mxu0 %v717_v0 }
  0x4c   :  { %571 = vmatpush3.bf16.msra.mxu1 %v570_v36  ;;  %p692_p0 = pnand %p691_p13, %p685_p10 }
  0x4d   :  { %572 = vmatprep.subr.bf16.mxu1 %v717_v0 }
  0x4e   :  { %550 = vmatpush3.bf16.msra.mxu0 %v549_v33 }
  0x4f   :  { %551 = vmatprep.subr.bf16.mxu0 %v717_v0 }
  0x50   :  { %574 = vmatpush3.bf16.msra.mxu1 %v573_v42 }
  0x51   :  { %575 = vmatprep.subr.bf16.mxu1 %v717_v0 }
  0x52   :  { %553 = vmatpush3.bf16.msra.mxu0 %v552_v39 }
  0x53   :  { %554 = vmatprep.subr.bf16.mxu0 %v717_v0 }
  0x54   :  { %577 = vmatpush3.bf16.msra.mxu1 %v576_v46 }
  0x55   :  { %578 = vmatprep.subr.bf16.mxu1 %v717_v0 }
  0x56   :  { %556 = vmatpush3.bf16.msra.mxu0 %v555_v45 }
  0x57   :  { %581 = vmatprep.subr.bf16.mxu0 %v717_v0 }
  0x58   :  { %580 = vmatpush3.bf16.msra.mxu1 %v579_v50 }
  0x59   :  { %461 = vmatmul.mubr.f32.vlgmr.msra.gmra.mrb[0].mxu0 %v68_v47 }
  0x5a   :  { %530 = vmatprep.mubr.msk.f32.mxu0 %vm718_vm0, %v719_v1  ;;  %583 = vmatpush3.bf16.msra.mxu0 %v582_v54  ;;  %v266_v1 = vld [vmem:[#allocation7 + $0x48] sm:$0xff] }
  0x5b   :  { %584 = vmatprep.subr.bf16.mxu0 %v717_v0  ;;  %v594_v2 = vpack.c.bf16 %v266_v1, %v265_v63 }
  0x5e   :  { %586 = vmatpush3.bf16.msra.mxu0 %v585_v56 }
  0x5f   :  { %587 = vmatprep.subr.bf16.mxu0 %v717_v0 }
  0x62   :  { %589 = vmatpush3.bf16.msra.mxu0 %v588_v59 }
  0x63   :  { %590 = vmatprep.subr.bf16.mxu0 %v717_v0 }
  0x66   :  { %592 = vmatpush3.bf16.msra.mxu0 %v591_v62 }
  0x67   :  { %593 = vmatprep.subr.bf16.mxu0 %v717_v0 }
  0x6a   :  { %595 = vmatpush3.bf16.msra.mxu0 %v594_v2 }
  0x6b   :  { %596 = vmatprep.subr.bf16.mxu0 %v717_v0 }
  0x6e   :  { %598 = vmatpush3.bf16.msra.mxu0 %v597_v5 }
  0x6f   :  { %599 = vmatprep.subr.bf16.mxu0 %v717_v0 }
  0x72   :  { %601 = vmatpush3.bf16.msra.mxu0 %v600_v8 }
  0x73   :  { %602 = vmatprep.subr.bf16.mxu0 %v717_v0 }
  0x76   :  { %604 = vmatpush3.bf16.msra.mxu0 %v603_v16 }
 0x12c   :  { %v158_v10 = vpop.f32.mrb[0].mxu0 }
 0x12d   :  { %v159_v11 = vadd.f32 %v373_v9, %v158_v10  ;;  %v462_v12 = vpop.f32.mrb[1].mxu0 }
 0x12f   :  { %v162_v13 = vmax.f32 %v159_v11, 0.0 }
 0x131   :  { %496 = vmatmul.mubr.f32.vlgmr.msra.gmra.mrb[0].mxu1 %v162_v13 }
 0x204   :  { %v252_v18 = vpop.f32.mrb[0].mxu1 }
 0x205   :  { %v253_v19 = vadd.f32 %v374_v17, %v252_v18  ;;  %v497_v0 = vpop.f32.mrb[1].mxu1 }
 0x207   :  { %v256_v20 = vmax.f32 %v253_v19, 0.0 }
 0x209   :  { %531 = vmatmul.mubr.f32.vlgmr.msra.gmra.mrb[2].mxu0 %v256_v20 }
 0x2dc   :  { %v346_v22 = vpop.f32.mrb[2].mxu0 }
 0x2dd   :  { %v347_v23 = vadd.f32 %v375_v21, %v346_v22  ;;  %v532_v24 = vpop.f32.mrb[3].mxu0 }
 0x2df   :  { %v376_v25 = vmul.f32 -1.442695, %v347_v23 }
 0x2e1   :  { %614 = vpow2.f32 %v376_v25 }
 0x2eb   :  { %v615_v26 = vpop.eup %614 }
 0x2ec   :  { %v353_v27 = vadd.f32 1.0, %v615_v26 }
 0x2ee   :  { %616 = vrcp.f32 %v353_v27 }
 0x2f8   :  { %v617_v28 = vpop.eup %616 }
 0x2f9   :  { %356 = vst [vmem:[#allocation8] sm:$0xff] %v617_v28 }
 0x2fa   :  { %695 = shalt.err (!%p692_p0)
}
 0x2fb   :  { %s696_s22 = scalar_lea.hbm %s874_s7, 128 }
 0x2fc   :  { %p697_p1 = scmp.ne.s32.totalorder %s874_s7, %s696_s22  ;;  %p700_p2 = scmp.lt.u32.totalorder %s696_s22, %s874_s7 }
 0x2fe   :  { %p702_p3 = pnand %p700_p2, %p697_p1 }
 0x300   :  { %705 = shalt.err (!%p702_p3)
}
 0x301   :  { %366 = dma.vmem_to_hbm [thread:$0]  %s364_s20, 128, %s874_s7, [#allocation4]  }
 0x302   :  { %710 = dma.done.wait [#allocation4], 128  }
 0x303   :  { %711 = vsyncadd [#allocation4], 4294967168 }
 0x304   :  { %370 = vsyncpa [#allocation3], 1 }
 0x305   :  { %371 = vsyncpa [#allocation6], 1 }
 0x306   :  { %372 = vsyncpa [#allocation4], 1 }

</bundles_post_ra>
